<compile_context>
chip_gen: v6e
topology: v6e:2x2x1
jax: 0.10.0
libtpu: 0.0.40
codegen_flags: <defaults>
</compile_context>

<pallas_src>
import jax
import jax.numpy as jnp
from jax import lax
from jax.experimental import pallas as pl
from jax.experimental.pallas import tpu as pltpu


# ---------------------------------------------------------------------------
# Kernels
# ---------------------------------------------------------------------------
def _normalize_scale_store(z1, z2, scale, emb1_ref, emb2_ref, e1s_ref, e2t_ref):
    """Shared epilogue: L2-normalize both paths, fold exp(t) into the bf16
    logits-LHS copy, emit the transposed bf16 logits-RHS copy."""
    eps2 = jnp.float32(1e-24)
    # Two sum-of-squares reductions issued back-to-back (pipeline through XLU);
    # normalize = one EUP rsqrt + one VPU multiply per path.
    s1 = jnp.sum(z1 * z1, axis=1, keepdims=True)
    s2 = jnp.sum(z2 * z2, axis=1, keepdims=True)
    e1 = z1 * lax.rsqrt(jnp.maximum(s1, eps2))
    e2 = z2 * lax.rsqrt(jnp.maximum(s2, eps2))
    emb1_ref[...] = e1
    emb2_ref[...] = e2
    # exp(t) scales the (tm, L) tile, not the (tm, tn) logits tile; bf16 copies
    # halve the logits kernel's input DMA bytes.
    e1s_ref[...] = (e1 * scale).astype(jnp.bfloat16)
    # Transpose paid once per row block here (XLU), not once per logits tile.
    e2t_ref[...] = e2.T.astype(jnp.bfloat16)


def scin_emb_kernel(t_ref, x1_ref, x2_ref, e1w_ref, b1_ref, e2w_ref, b2_ref,
                    w1_ref, w2_ref, emb1_ref, emb2_ref, e1s_ref, e2t_ref):
    """Unfused variant (v5e-class chips: 128-wide MXUs already filled)."""
    bf16 = jnp.bfloat16
    f32 = jnp.float32
    f1 = jnp.maximum(
        jnp.dot(x1_ref[...].astype(bf16), e1w_ref[...].astype(bf16),
                preferred_element_type=f32) + b1_ref[...], 0.0)
    f2 = jnp.maximum(
        jnp.dot(x2_ref[...].astype(bf16), e2w_ref[...].astype(bf16),
                preferred_element_type=f32) + b2_ref[...], 0.0)
    z1 = jnp.dot(f1.astype(bf16), w1_ref[...].astype(bf16),
                 preferred_element_type=f32)
    z2 = jnp.dot(f2.astype(bf16), w2_ref[...].astype(bf16),
                 preferred_element_type=f32)
    _normalize_scale_store(z1, z2, jnp.exp(t_ref[0, 0]),
                           emb1_ref, emb2_ref, e1s_ref, e2t_ref)


def scin_emb_fused_kernel(t_ref, xc_ref, ec_ref, bc_ref, wc_ref,
                          emb1_ref, emb2_ref, e1s_ref, e2t_ref):
    """Block-diagonal fused variant (v6e/v7x 256-wide MXU): one encoder matmul
    [x1|x2] @ blockdiag(E1,E2) and one projection [f1|f2] @ blockdiag(W1,W2)."""
    bf16 = jnp.bfloat16
    f32 = jnp.float32
    L = emb1_ref.shape[1]
    fc = jnp.maximum(
        jnp.dot(xc_ref[...].astype(bf16), ec_ref[...].astype(bf16),
                preferred_element_type=f32) + bc_ref[...], 0.0)
    zc = jnp.dot(fc.astype(bf16), wc_ref[...].astype(bf16),
                 preferred_element_type=f32)
    _normalize_scale_store(zc[:, :L], zc[:, L:], jnp.exp(t_ref[0, 0]),
                           emb1_ref, emb2_ref, e1s_ref, e2t_ref)


def scin_logits_kernel(e1s_ref, e2t_ref, logits_ref):
    """logits tile = (emb1 * exp(t)) @ emb2^T — pure MXU, lane-dense store."""
    logits_ref[...] = jnp.dot(e1s_ref[...], e2t_ref[...],
                              preferred_element_type=jnp.float32)


# ---------------------------------------------------------------------------
# Wrapper
# ---------------------------------------------------------------------------
def _round_up(x, m):
    return (x + m - 1) // m * m


def _default_fuse():
    """Block-diagonal fusion only pays off on 256-wide MXUs (v6e / v7x)."""
    try:
        kind = jax.devices()[0].device_kind.lower()
    except Exception:
        return False
    return ("v6" in kind) or ("v7" in kind)


def scin_forward(x1, x2, params, *, fuse=None, block_rows=None):
    """Returns (logits, mod1_emb, mod2_emb), matching sCIN.forward."""
    n, d1 = x1.shape
    d2 = x2.shape[1]
    L = params["W_mod1"].shape[0]
    f32 = jnp.float32

    if fuse is None:
        fuse = _default_fuse()

    # Row/column tile. 256 keeps per-step overhead amortized while every block
    # (double-buffered inputs + (T,T) f32 logits tile) stays far under the
    # 32 MiB scoped VMEM default on v5e/v6e and v7x's 64 MiB physical VMEM.
    T = block_rows if block_rows is not None else (128 if n <= 128 else 256)
    n_pad = _round_up(n, T)
    grid_rows = n_pad // T

    x1p = x1.astype(f32)
    x2p = x2.astype(f32)
    if n_pad != n:
        x1p = jnp.pad(x1p, ((0, n_pad - n), (0, 0)))
        x2p = jnp.pad(x2p, ((0, n_pad - n), (0, 0)))

    t = jnp.asarray(params["t"], dtype=f32).reshape(1, 1)
    e1w = params["E1_w"].astype(f32)
    b1 = params["E1_b"].astype(f32)
    e2w = params["E2_w"].astype(f32)
    b2 = params["E2_b"].astype(f32)
    w1 = params["W_mod1"].astype(f32)
    w2 = params["W_mod2"].astype(f32)

    smem_scalar = pl.BlockSpec((1, 1), lambda i: (0, 0),
                               memory_space=pltpu.MemorySpace.SMEM)

    def row_spec(cols):
        return pl.BlockSpec((T, cols), lambda i: (i, 0))

    def resident(rows, cols):
        # Same block for every grid step -> DMA'd once, stays in VMEM.
        return pl.BlockSpec((rows, cols), lambda i: (0, 0))

    emb_out_shape = (
        jax.ShapeDtypeStruct((n_pad, L), f32),           # emb1 (module output)
        jax.ShapeDtypeStruct((n_pad, L), f32),           # emb2 (module output)
        jax.ShapeDtypeStruct((n_pad, L), jnp.bfloat16),  # emb1 * exp(t)
        jax.ShapeDtypeStruct((L, n_pad), jnp.bfloat16),  # emb2^T
    )
    emb_out_specs = (
        row_spec(L), row_spec(L), row_spec(L),
        pl.BlockSpec((L, T), lambda i: (0, i)),
    )
    emb_compiler_params = pltpu.CompilerParams(
        dimension_semantics=("parallel",),
        vmem_limit_bytes=32 * 1024 * 1024)
    emb_cost = pl.CostEstimate(
        flops=2 * n_pad * L * (d1 + d2 + 2 * L) + 8 * n_pad * L,
        transcendentals=2 * n_pad + grid_rows,
        bytes_accessed=(4 * (n_pad * (d1 + d2) + (d1 + d2) * L + 2 * L * L + 2 * L + 1)
                        + 4 * 2 * n_pad * L + 2 * 2 * n_pad * L))

    if fuse:
        # Build block-diagonal operands once in the wrapper (tiny, resident).
        xc = jnp.concatenate([x1p, x2p], axis=1)                       # (n_pad, d1+d2)
        ec = jnp.zeros((d1 + d2, 2 * L), f32)
        ec = ec.at[:d1, :L].set(e1w).at[d1:, L:].set(e2w)              # (d1+d2, 2L)
        bc = jnp.concatenate([b1, b2], axis=1)                         # (1, 2L)
        wc = jnp.zeros((2 * L, 2 * L), f32)
        wc = wc.at[:L, :L].set(w1).at[L:, L:].set(w2)                  # (2L, 2L)
        emb1, emb2, e1s, e2t = pl.pallas_call(
            scin_emb_fused_kernel,
            grid=(grid_rows,),
            in_specs=[smem_scalar, row_spec(d1 + d2),
                      resident(d1 + d2, 2 * L), resident(1, 2 * L),
                      resident(2 * L, 2 * L)],
            out_specs=emb_out_specs,
            out_shape=emb_out_shape,
            compiler_params=emb_compiler_params,
            cost_estimate=emb_cost,
        )(t, xc, ec, bc, wc)
    else:
        emb1, emb2, e1s, e2t = pl.pallas_call(
            scin_emb_kernel,
            grid=(grid_rows,),
            in_specs=[smem_scalar, row_spec(d1), row_spec(d2),
                      resident(d1, L), resident(1, L),
                      resident(d2, L), resident(1, L),
                      resident(L, L), resident(L, L)],
            out_specs=emb_out_specs,
            out_shape=emb_out_shape,
            compiler_params=emb_compiler_params,
            cost_estimate=emb_cost,
        )(t, x1p, x2p, e1w, b1, e2w, b2, w1, w2)

    # --- logits = (emb1 * exp(t)) @ emb2^T : 2-D tiled, both axes parallel ---
    logits = pl.pallas_call(
        scin_logits_kernel,
        grid=(grid_rows, grid_rows),
        in_specs=[pl.BlockSpec((T, L), lambda i, j: (i, 0)),
                  pl.BlockSpec((L, T), lambda i, j: (0, j))],
        out_specs=pl.BlockSpec((T, T), lambda i, j: (i, j)),
        out_shape=jax.ShapeDtypeStruct((n_pad, n_pad), f32),
        compiler_params=pltpu.CompilerParams(
            dimension_semantics=("parallel", "parallel"),
            vmem_limit_bytes=32 * 1024 * 1024),
        cost_estimate=pl.CostEstimate(
            flops=2 * n_pad * n_pad * L,
            transcendentals=0,
            bytes_accessed=2 * 2 * n_pad * L * grid_rows + 4 * n_pad * n_pad),
    )(e1s, e2t)

    if n_pad != n:
        logits = logits[:n, :n]
        emb1 = emb1[:n]
        emb2 = emb2[:n]
    return logits, emb1, emb2


# ---------------------------------------------------------------------------
# Pure-JAX reference (same bf16-MXU / f32-accumulate recipe as the kernels)
# ---------------------------------------------------------------------------
def scin_reference(x1, x2, params):
    bf16 = jnp.bfloat16
    f32 = jnp.float32
    f1 = jnp.maximum(
        jnp.dot(x1.astype(bf16), params["E1_w"].astype(bf16),
                preferred_element_type=f32) + params["E1_b"], 0.0)
    f2 = jnp.maximum(
        jnp.dot(x2.astype(bf16), params["E2_w"].astype(bf16),
                preferred_element_type=f32) + params["E2_b"], 0.0)
    z1 = jnp.dot(f1.astype(bf16), params["W_mod1"].astype(bf16),
                 preferred_element_type=f32)
    z2 = jnp.dot(f2.astype(bf16), params["W_mod2"].astype(bf16),
                 preferred_element_type=f32)
    e1 = z1 * lax.rsqrt(jnp.maximum(jnp.sum(z1 * z1, axis=1, keepdims=True), 1e-24))
    e2 = z2 * lax.rsqrt(jnp.maximum(jnp.sum(z2 * z2, axis=1, keepdims=True), 1e-24))
    scale = jnp.exp(jnp.asarray(params["t"], dtype=f32))
    logits = jnp.dot((e1 * scale).astype(bf16), e2.astype(bf16).T,
                     preferred_element_type=f32)
    return logits, e1, e2


if __name__ == "__main__":
    # Small, deterministic synthetic setup. latent_dim = 128 keeps every tile
    # lane-dense; the batch is padded up to the row tile inside the wrapper.
    batch = 8
    mod1_dim = 32
    mod2_dim = 48
    latent_dim = 128
    t_init = 0.07

    key = jax.random.PRNGKey(0)
    k = jax.random.split(key, 6)

    x1 = jax.random.normal(k[0], (batch, mod1_dim), dtype=jnp.float32)
    x2 = jax.random.normal(k[1], (batch, mod2_dim), dtype=jnp.float32)

    params = {
        # synthetic encoder params (Linear -> ReLU), scaled like fan-in init
        "E1_w": jax.random.normal(k[2], (mod1_dim, latent_dim), jnp.float32) / jnp.sqrt(mod1_dim),
        "E1_b": jnp.zeros((1, latent_dim), jnp.float32),
        "E2_w": jax.random.normal(k[3], (mod2_dim, latent_dim), jnp.float32) / jnp.sqrt(mod2_dim),
        "E2_b": jnp.zeros((1, latent_dim), jnp.float32),
        # sCIN parameters: W_mod1, W_mod2 ~ randn, t scalar
        "W_mod1": jax.random.normal(k[4], (latent_dim, latent_dim), jnp.float32),
        "W_mod2": jax.random.normal(k[5], (latent_dim, latent_dim), jnp.float32),
        "t": jnp.float32(t_init),
    }

    ref_logits, ref_e1, ref_e2 = scin_reference(x1, x2, params)

    # Exercise both MXU paths: unfused (v5e-style) and block-diagonal fused
    # (v6e/v7x-style). The default path is picked from the device kind.
    for fuse in (False, True):
        logits, emb1, emb2 = scin_forward(x1, x2, params, fuse=fuse)
        jax.block_until_ready((logits, emb1, emb2))
        assert logits.shape == (batch, batch)
        assert emb1.shape == (batch, latent_dim) and emb2.shape == (batch, latent_dim)
        assert jnp.allclose(logits, ref_logits, atol=2e-3, rtol=2e-3), f"logits mismatch (fuse={fuse})"
        assert jnp.allclose(emb1, ref_e1, atol=2e-3, rtol=2e-3), f"mod1_emb mismatch (fuse={fuse})"
        assert jnp.allclose(emb2, ref_e2, atol=2e-3, rtol=2e-3), f"mod2_emb mismatch (fuse={fuse})"

    print("KERNEL_OK")
</pallas_src>

<mosaic_0001>
module attributes {stable_mosaic.version = 11 : i64} {
  func.func @scin_emb_kernel(%arg0: i32, %arg1: memref<1x1xf32, #tpu.memory_space<smem>>, %arg2: memref<128x32xf32, #tpu.memory_space<vmem>>, %arg3: memref<128x48xf32, #tpu.memory_space<vmem>>, %arg4: memref<32x128xf32, #tpu.memory_space<vmem>>, %arg5: memref<1x128xf32, #tpu.memory_space<vmem>>, %arg6: memref<48x128xf32, #tpu.memory_space<vmem>>, %arg7: memref<1x128xf32, #tpu.memory_space<vmem>>, %arg8: memref<128x128xf32, #tpu.memory_space<vmem>>, %arg9: memref<128x128xf32, #tpu.memory_space<vmem>>, %arg10: memref<128x128xf32, #tpu.memory_space<vmem>>, %arg11: memref<128x128xf32, #tpu.memory_space<vmem>>, %arg12: memref<128x128xbf16, #tpu.memory_space<vmem>>, %arg13: memref<128x128xbf16, #tpu.memory_space<vmem>>) attributes {dimension_semantics = [#tpu.dimension_semantics<parallel>], iteration_bounds = array<i64: 1>, scalar_prefetch = 0 : i64, scratch_operands = 0 : i64, tpu.core_type = #tpu.core_type<tc>, window_params = [{transform_indices = @transform_0, window_bounds = array<i64: 1, 1>}, {transform_indices = @transform_1, window_bounds = array<i64: 128, 32>}, {transform_indices = @transform_2, window_bounds = array<i64: 128, 48>}, {pipeline_mode = #tpu.pipeline_mode<synchronous>, transform_indices = @transform_3, window_bounds = array<i64: 32, 128>}, {pipeline_mode = #tpu.pipeline_mode<synchronous>, transform_indices = @transform_4, window_bounds = array<i64: 1, 128>}, {pipeline_mode = #tpu.pipeline_mode<synchronous>, transform_indices = @transform_5, window_bounds = array<i64: 48, 128>}, {pipeline_mode = #tpu.pipeline_mode<synchronous>, transform_indices = @transform_6, window_bounds = array<i64: 1, 128>}, {pipeline_mode = #tpu.pipeline_mode<synchronous>, transform_indices = @transform_7, window_bounds = array<i64: 128, 128>}, {pipeline_mode = #tpu.pipeline_mode<synchronous>, transform_indices = @transform_8, window_bounds = array<i64: 128, 128>}, {transform_indices = @transform_9, window_bounds = array<i64: 128, 128>}, {transform_indices = @transform_10, window_bounds = array<i64: 128, 128>}, {transform_indices = @transform_11, window_bounds = array<i64: 128, 128>}, {transform_indices = @transform_12, window_bounds = array<i64: 128, 128>}]} {
    %c0 = arith.constant 0 : index
    %c0_0 = arith.constant 0 : index
    %0 = vector.load %arg2[%c0, %c0_0] : memref<128x32xf32, #tpu.memory_space<vmem>>, vector<128x32xf32>
    %1 = arith.truncf %0 : vector<128x32xf32> to vector<128x32xbf16>
    %c0_1 = arith.constant 0 : index
    %c0_2 = arith.constant 0 : index
    %2 = vector.load %arg4[%c0_1, %c0_2] : memref<32x128xf32, #tpu.memory_space<vmem>>, vector<32x128xf32>
    %3 = arith.truncf %2 : vector<32x128xf32> to vector<32x128xbf16>
    %cst = arith.constant dense<0.000000e+00> : vector<128x128xf32>
    %4 = tpu.matmul %1, %3, %cst {dimension_numbers = #tpu.dot_dimension_numbers<[1], [0], [0], [1], [0, 0, 1, 1], [], []>} : vector<128x32xbf16>, vector<32x128xbf16>, vector<128x128xf32> -> vector<128x128xf32>
    %c0_3 = arith.constant 0 : index
    %c0_4 = arith.constant 0 : index
    %5 = vector.load %arg5[%c0_3, %c0_4] : memref<1x128xf32, #tpu.memory_space<vmem>>, vector<1x128xf32>
    %6 = vector.broadcast %5 : vector<1x128xf32> to vector<128x128xf32>
    %7 = arith.addf %4, %6 : vector<128x128xf32>
    %cst_5 = arith.constant 0.000000e+00 : f32
    %8 = vector.broadcast %cst_5 : f32 to vector<128x128xf32>
    %9 = arith.maximumf %7, %8 : vector<128x128xf32>
    %c0_6 = arith.constant 0 : index
    %c0_7 = arith.constant 0 : index
    %10 = vector.load %arg3[%c0_6, %c0_7] : memref<128x48xf32, #tpu.memory_space<vmem>>, vector<128x48xf32>
    %11 = arith.truncf %10 : vector<128x48xf32> to vector<128x48xbf16>
    %c0_8 = arith.constant 0 : index
    %c0_9 = arith.constant 0 : index
    %12 = vector.load %arg6[%c0_8, %c0_9] : memref<48x128xf32, #tpu.memory_space<vmem>>, vector<48x128xf32>
    %13 = arith.truncf %12 : vector<48x128xf32> to vector<48x128xbf16>
    %cst_10 = arith.constant dense<0.000000e+00> : vector<128x128xf32>
    %14 = tpu.matmul %11, %13, %cst_10 {dimension_numbers = #tpu.dot_dimension_numbers<[1], [0], [0], [1], [0, 0, 1, 1], [], []>} : vector<128x48xbf16>, vector<48x128xbf16>, vector<128x128xf32> -> vector<128x128xf32>
    %c0_11 = arith.constant 0 : index
    %c0_12 = arith.constant 0 : index
    %15 = vector.load %arg7[%c0_11, %c0_12] : memref<1x128xf32, #tpu.memory_space<vmem>>, vector<1x128xf32>
    %16 = vector.broadcast %15 : vector<1x128xf32> to vector<128x128xf32>
    %17 = arith.addf %14, %16 : vector<128x128xf32>
    %cst_13 = arith.constant 0.000000e+00 : f32
    %18 = vector.broadcast %cst_13 : f32 to vector<128x128xf32>
    %19 = arith.maximumf %17, %18 : vector<128x128xf32>
    %20 = arith.truncf %9 : vector<128x128xf32> to vector<128x128xbf16>
    %c0_14 = arith.constant 0 : index
    %c0_15 = arith.constant 0 : index
    %21 = vector.load %arg8[%c0_14, %c0_15] : memref<128x128xf32, #tpu.memory_space<vmem>>, vector<128x128xf32>
    %22 = arith.truncf %21 : vector<128x128xf32> to vector<128x128xbf16>
    %cst_16 = arith.constant dense<0.000000e+00> : vector<128x128xf32>
    %23 = tpu.matmul %20, %22, %cst_16 {dimension_numbers = #tpu.dot_dimension_numbers<[1], [0], [0], [1], [0, 0, 1, 1], [], []>} : vector<128x128xbf16>, vector<128x128xbf16>, vector<128x128xf32> -> vector<128x128xf32>
    %24 = arith.truncf %19 : vector<128x128xf32> to vector<128x128xbf16>
    %c0_17 = arith.constant 0 : index
    %c0_18 = arith.constant 0 : index
    %25 = vector.load %arg9[%c0_17, %c0_18] : memref<128x128xf32, #tpu.memory_space<vmem>>, vector<128x128xf32>
    %26 = arith.truncf %25 : vector<128x128xf32> to vector<128x128xbf16>
    %cst_19 = arith.constant dense<0.000000e+00> : vector<128x128xf32>
    %27 = tpu.matmul %24, %26, %cst_19 {dimension_numbers = #tpu.dot_dimension_numbers<[1], [0], [0], [1], [0, 0, 1, 1], [], []>} : vector<128x128xbf16>, vector<128x128xbf16>, vector<128x128xf32> -> vector<128x128xf32>
    %c0_20 = arith.constant 0 : index
    %c0_21 = arith.constant 0 : index
    %28 = memref.load %arg1[%c0_20, %c0_21] : memref<1x1xf32, #tpu.memory_space<smem>>
    %29 = math.exp %28 : f32
    %30 = arith.mulf %23, %23 : vector<128x128xf32>
    %cst_22 = arith.constant dense<0.000000e+00> : vector<128xf32>
    %31 = vector.multi_reduction <add>, %30, %cst_22 [1] : vector<128x128xf32> to vector<128xf32>
    %32 = vector.shape_cast %31 : vector<128xf32> to vector<128x1xf32>
    %33 = arith.mulf %27, %27 : vector<128x128xf32>
    %cst_23 = arith.constant dense<0.000000e+00> : vector<128xf32>
    %34 = vector.multi_reduction <add>, %33, %cst_23 [1] : vector<128x128xf32> to vector<128xf32>
    %35 = vector.shape_cast %34 : vector<128xf32> to vector<128x1xf32>
    %cst_24 = arith.constant 1.000000e-24 : f32
    %36 = vector.broadcast %cst_24 : f32 to vector<128x1xf32>
    %37 = arith.maximumf %32, %36 : vector<128x1xf32>
    %38 = math.rsqrt %37 : vector<128x1xf32>
    %39 = vector.broadcast %38 : vector<128x1xf32> to vector<128x128xf32>
    %40 = arith.mulf %23, %39 : vector<128x128xf32>
    %cst_25 = arith.constant 1.000000e-24 : f32
    %41 = vector.broadcast %cst_25 : f32 to vector<128x1xf32>
    %42 = arith.maximumf %35, %41 : vector<128x1xf32>
    %43 = math.rsqrt %42 : vector<128x1xf32>
    %44 = vector.broadcast %43 : vector<128x1xf32> to vector<128x128xf32>
    %45 = arith.mulf %27, %44 : vector<128x128xf32>
    %c0_26 = arith.constant 0 : index
    %c0_27 = arith.constant 0 : index
    %46 = vector.load %arg10[%c0_26, %c0_27] : memref<128x128xf32, #tpu.memory_space<vmem>>, vector<128x128xf32>
    tpu.vector_store %arg10[%c0_26, %c0_27], %40 {strides = array<i32>} : memref<128x128xf32, #tpu.memory_space<vmem>>, vector<128x128xf32>,
    %c0_28 = arith.constant 0 : index
    %c0_29 = arith.constant 0 : index
    %47 = vector.load %arg11[%c0_28, %c0_29] : memref<128x128xf32, #tpu.memory_space<vmem>>, vector<128x128xf32>
    tpu.vector_store %arg11[%c0_28, %c0_29], %45 {strides = array<i32>} : memref<128x128xf32, #tpu.memory_space<vmem>>, vector<128x128xf32>,
    %48 = vector.broadcast %29 : f32 to vector<128x128xf32>
    %49 = arith.mulf %40, %48 : vector<128x128xf32>
    %50 = arith.truncf %49 : vector<128x128xf32> to vector<128x128xbf16>
    %c0_30 = arith.constant 0 : index
    %c0_31 = arith.constant 0 : index
    %51 = vector.load %arg12[%c0_30, %c0_31] : memref<128x128xbf16, #tpu.memory_space<vmem>>, vector<128x128xbf16>
    tpu.vector_store %arg12[%c0_30, %c0_31], %50 {strides = array<i32>} : memref<128x128xbf16, #tpu.memory_space<vmem>>, vector<128x128xbf16>,
    %52 = tpu.transpose %45, [1, 0] : vector<128x128xf32> -> vector<128x128xf32>
    %53 = arith.truncf %52 : vector<128x128xf32> to vector<128x128xbf16>
    %c0_32 = arith.constant 0 : index
    %c0_33 = arith.constant 0 : index
    %54 = vector.load %arg13[%c0_32, %c0_33] : memref<128x128xbf16, #tpu.memory_space<vmem>>, vector<128x128xbf16>
    tpu.vector_store %arg13[%c0_32, %c0_33], %53 {strides = array<i32>} : memref<128x128xbf16, #tpu.memory_space<vmem>>, vector<128x128xbf16>,
    return
  }
  func.func @transform_0(%arg0: i32) -> (i32, i32) {
    %c0_i32 = arith.constant 0 : i32
    %c0_i32_0 = arith.constant 0 : i32
    %c0_i32_1 = arith.constant 0 : i32
    return %c0_i32, %c0_i32_0 : i32, i32
  }
  func.func @transform_1(%arg0: i32) -> (i32, i32) {
    %c0_i32 = arith.constant 0 : i32
    %c0_i32_0 = arith.constant 0 : i32
    return %arg0, %c0_i32 : i32, i32
  }
  func.func @transform_2(%arg0: i32) -> (i32, i32) {
    %c0_i32 = arith.constant 0 : i32
    %c0_i32_0 = arith.constant 0 : i32
    return %arg0, %c0_i32 : i32, i32
  }
  func.func @transform_3(%arg0: i32) -> (i32, i32) {
    %c0_i32 = arith.constant 0 : i32
    %c0_i32_0 = arith.constant 0 : i32
    %c0_i32_1 = arith.constant 0 : i32
    return %c0_i32, %c0_i32_0 : i32, i32
  }
  func.func @transform_4(%arg0: i32) -> (i32, i32) {
    %c0_i32 = arith.constant 0 : i32
    %c0_i32_0 = arith.constant 0 : i32
    %c0_i32_1 = arith.constant 0 : i32
    return %c0_i32, %c0_i32_0 : i32, i32
  }
  func.func @transform_5(%arg0: i32) -> (i32, i32) {
    %c0_i32 = arith.constant 0 : i32
    %c0_i32_0 = arith.constant 0 : i32
    %c0_i32_1 = arith.constant 0 : i32
    return %c0_i32, %c0_i32_0 : i32, i32
  }
  func.func @transform_6(%arg0: i32) -> (i32, i32) {
    %c0_i32 = arith.constant 0 : i32
    %c0_i32_0 = arith.constant 0 : i32
    %c0_i32_1 = arith.constant 0 : i32
    return %c0_i32, %c0_i32_0 : i32, i32
  }
  func.func @transform_7(%arg0: i32) -> (i32, i32) {
    %c0_i32 = arith.constant 0 : i32
    %c0_i32_0 = arith.constant 0 : i32
    %c0_i32_1 = arith.constant 0 : i32
    return %c0_i32, %c0_i32_0 : i32, i32
  }
  func.func @transform_8(%arg0: i32) -> (i32, i32) {
    %c0_i32 = arith.constant 0 : i32
    %c0_i32_0 = arith.constant 0 : i32
    %c0_i32_1 = arith.constant 0 : i32
    return %c0_i32, %c0_i32_0 : i32, i32
  }
  func.func @transform_9(%arg0: i32) -> (i32, i32) {
    %c0_i32 = arith.constant 0 : i32
    %c0_i32_0 = arith.constant 0 : i32
    return %arg0, %c0_i32 : i32, i32
  }
  func.func @transform_10(%arg0: i32) -> (i32, i32) {
    %c0_i32 = arith.constant 0 : i32
    %c0_i32_0 = arith.constant 0 : i32
    return %arg0, %c0_i32 : i32, i32
  }
  func.func @transform_11(%arg0: i32) -> (i32, i32) {
    %c0_i32 = arith.constant 0 : i32
    %c0_i32_0 = arith.constant 0 : i32
    return %arg0, %c0_i32 : i32, i32
  }
  func.func @transform_12(%arg0: i32) -> (i32, i32) {
    %c0_i32 = arith.constant 0 : i32
    %c0_i32_0 = arith.constant 0 : i32
    return %c0_i32, %arg0 : i32, i32
  }
}

</mosaic_0001>

<bundles_post_ra>
// kernel: tpu_custom_call.1
= control target key start
LH: loop header
LB: loop body
LE: loop exit
PB: predicated region body
PF: predicated region fallthrough
CT: control target
= control target key end

     0   :  { %19 = vsyncpa [#allocation4], 0  ;;  %s2259_s0 = inlined_call_operand.<no memory space> [shape: f32[1,1], index: 0, kind: input, shape index: {}]   ;;  %s2260_s1 = inlined_call_operand.vmem [shape: f32[128,32], index: 1, kind: input, shape index: {}]   ;;  %s2261_s2 = inlined_call_operand.vmem [shape: f32[128,48], index: 2, kind: input, shape index: {}]   ;;  %s2262_s3 = inlined_call_operand.vmem [shape: f32[32,128], index: 3, kind: input, shape index: {}]   ;;  %s2263_s4 = inlined_call_operand.vmem [shape: f32[1,128], index: 4, kind: input, shape index: {}]   ;;  %s2264_s5 = inlined_call_operand.hbm [shape: f32[48,128], index: 5, kind: input, shape index: {}]   ;;  %s2265_s6 = inlined_call_operand.vmem [shape: f32[1,128], index: 6, kind: input, shape index: {}]   ;;  %s2266_s7 = inlined_call_operand.vmem [shape: f32[128,128], index: 7, kind: input, shape index: {}]   ;;  %s2267_s8 = inlined_call_operand.vmem [shape: f32[128,128], index: 8, kind: input, shape index: {}]   ;;  %s2268_s9 = inlined_call_operand.hbm [shape: f32[128,128], index: 9, kind: output, shape index: {0}]   ;;  %s2269_s10 = inlined_call_operand.hbm [shape: f32[128,128], index: 10, kind: output, shape index: {1}]   ;;  %s2270_s11 = inlined_call_operand.hbm [shape: bf16[128,128], index: 11, kind: output, shape index: {2}]   ;;  %s2271_s12 = inlined_call_operand.hbm [shape: bf16[128,128], index: 12, kind: output, shape index: {3}]  }
   0x1   :  { %20 = vsyncpa [#allocation5], 0 }
   0x2   :  { %21 = vsyncpa [#allocation8], 0 }
   0x3   :  { %22 = vsyncpa [#allocation11], 0  ;;  %s1688_s21 = smov [#allocation3]  }
   0x4   :  { %s38_s22 = sshll.u32 %s1688_s21, 4  ;;  %s39_s22 = int_to_ptr.vmem [resolvable:$true] %s38_s22 }
   0x5   :  { %s1588_s23 = scalar_lea.vmem %s39_s22, 768  ;;  %p1593_p1 = scmp.lt.s32.totalorder %s39_s22, %s39_s22 }
   0x6   :  { %p1589_p0 = scmp.ne.s32.totalorder %s39_s22, %s1588_s23  ;;  %p1594_p2 = scmp.lt.s32.totalorder %s1588_s23, %s1588_s23 }
   0x8   :  { %p1595_p3 = por %p1594_p2, %p1593_p1 }
   0xa   :  { %p1596_p4 = pnand %p1595_p3, %p1589_p0 }
   0xc   :  { %1599 = shalt.err (!%p1596_p4)
}
   0xd   :  { %s1689_s24 = smov 128   ;;  %s1690_s25 = smov 8  }
   0xe   :  { %44 = dma.hbm_to_vmem [thread:$0]  %s2264_s5, 768, %s39_s22, [#allocation4], %s1689_s24, %s1689_s24, %s1690_s25  }
   0xf   :  { %1680 = dma.done.wait [#allocation4], 768  }
  0x10   :  { %1681 = vsyncadd [#allocation4], 4294966528  ;;  %v258_v0 = vld [vmem:[#allocation3 + $0x20] sm:$0xff]  ;;  %v259_v1 = vld [vmem:[#allocation3 + $0x28] sm:$0xff]  ;;  %vm270_vm0 = vcmask 392192   ;;  %vm92_vm1 = vcmask 261120  }
  0x11   :  { %v256_v2 = vld [vmem:[#allocation3 + $0x10] sm:$0xff]  ;;  %v262_v3 = vpack.c.bf16 %v259_v1, %v258_v0  ;;  %v257_v4 = vld [vmem:[#allocation3 + $0x18] sm:$0xff]  ;;  %v254_v5 = vld [vmem:[#allocation3] sm:$0xff]  ;;  %s1692_s16 = smov [#allocation6]  }
  0x12   :  { %v261_v6 = vpack.c.bf16 %v257_v4, %v256_v2  ;;  %v255_v7 = vld [vmem:[#allocation3 + $0x8] sm:$0xff]  ;;  %v230_v8 = vld [vmem:[%s2261_s2] sm:$0xff]  ;;  %v81_v12 = vld [vmem:[%s2262_s3 + $0x10] sm:$0xff]  ;;  %s1109_s17 = sshll.u32 %s1692_s16, 4  ;;  %s1110_s17 = int_to_ptr.vmem [resolvable:$true] %s1109_s17 }
  0x13   :  { %v231_v9 = vld [vmem:[%s2261_s2 + $0x8] sm:$0xff]  ;;  %1417 = vmatprep.subr.bf16.mxu1 %v262_v3  ;;  %v260_v11 = vpack.c.bf16 %v255_v7, %v254_v5  ;;  %v232_v13 = vld [vmem:[%s2261_s2 + $0x10] sm:$0xff]  ;;  %v233_v14 = vld [vmem:[%s2261_s2 + $0x18] sm:$0xff] }
  0x14   :  { %v246_v10 = vpack.c.bf16 %v231_v9, %v230_v8  ;;  %1418 = vmatpush3.bf16.msra.mxu1 %v262_v3  ;;  %v82_v15 = vld [vmem:[%s2262_s3 + $0x18] sm:$0xff]  ;;  %v79_v17 = vld [vmem:[%s2262_s3] sm:$0xff]  ;;  %v80_v18 = vld [vmem:[%s2262_s3 + $0x8] sm:$0xff]  ;;  %v247_v25 = vpack.c.bf16 %v233_v14, %v232_v13 }
  0x15   :  { %1419 = vmatprep.subr.bf16.mxu1 %v261_v6  ;;  %v84_v16 = vpack.c.bf16 %v82_v15, %v81_v12  ;;  %v55_v19 = vld [vmem:[%s2260_s1] sm:$0xff]  ;;  %v235_v21 = vld [vmem:[%s2261_s2 + $0x28] sm:$0xff]  ;;  %v83_v22 = vpack.c.bf16 %v80_v18, %v79_v17  ;;  %v57_v26 = vld [vmem:[%s2260_s1 + $0x10] sm:$0xff] }
  0x16   :  { %1423 = vmatprep.mubr.msk.bf16.mxu1 %vm270_vm0, %v246_v10  ;;  %v234_v20 = vld [vmem:[%s2261_s2 + $0x20] sm:$0xff]  ;;  %v56_v23 = vld [vmem:[%s2260_s1 + $0x8] sm:$0xff]  ;;  %v58_v27 = vld [vmem:[%s2260_s1 + $0x18] sm:$0xff] }
  0x17   :  { %1397 = vmatprep.subr.bf16.mxu0 %v84_v16  ;;  %v71_v24 = vpack.c.bf16 %v56_v23, %v55_v19  ;;  %v248_v28 = vpack.c.bf16 %v235_v21, %v234_v20  ;;  %v59_v29 = vld [vmem:[%s2260_s1 + $0x20] sm:$0xff]  ;;  %v60_v30 = vld [vmem:[%s2260_s1 + $0x28] sm:$0xff]  ;;  %v72_v31 = vpack.c.bf16 %v58_v27, %v57_v26  ;;  %v559_v32 = vld [vmem:[%s2267_s8 + $0x70] sm:$0xff] }
  0x18   :  { %1420 = vmatpush3.bf16.msra.mxu1 %v261_v6  ;;  %1398 = vmatpush3.bf16.msra.mxu0 %v84_v16  ;;  %v560_v33 = vld [vmem:[%s2267_s8 + $0x78] sm:$0xff]  ;;  %v557_v34 = vld [vmem:[%s2267_s8 + $0x60] sm:$0xff]  ;;  %v236_v35 = vld [vmem:[%s2261_s2 + $0x30] sm:$0xff]  ;;  %v73_v36 = vpack.c.bf16 %v60_v30, %v59_v29 }
  0x19   :  { %1421 = vmatprep.subr.bf16.mxu1 %v260_v11  ;;  %1399 = vmatprep.subr.bf16.mxu0 %v83_v22  ;;  %v568_v37 = vpack.c.bf16 %v560_v33, %v559_v32  ;;  %v558_v38 = vld [vmem:[%s2267_s8 + $0x68] sm:$0xff]  ;;  %v237_v39 = vld [vmem:[%s2261_s2 + $0x38] sm:$0xff]  ;;  %v555_v41 = vld [vmem:[%s2267_s8 + $0x50] sm:$0xff] }
  0x1a   :  { %1401 = vmatprep.mubr.msk.bf16.mxu0 %vm92_vm1, %v71_v24  ;;  %v567_v40 = vpack.c.bf16 %v558_v38, %v557_v34  ;;  %v556_v42 = vld [vmem:[%s2267_s8 + $0x58] sm:$0xff]  ;;  %v238_v43 = vld [vmem:[%s2261_s2 + $0x40] sm:$0xff]  ;;  %v239_v44 = vld [vmem:[%s2261_s2 + $0x48] sm:$0xff]  ;;  %v249_v45 = vpack.c.bf16 %v237_v39, %v236_v35 }
  0x1b   :  { %v61_v46 = vld [vmem:[%s2260_s1 + $0x30] sm:$0xff]  ;;  %v62_v47 = vld [vmem:[%s2260_s1 + $0x38] sm:$0xff]  ;;  %v63_v48 = vld [vmem:[%s2260_s1 + $0x40] sm:$0xff]  ;;  %v566_v49 = vpack.c.bf16 %v556_v42, %v555_v41  ;;  %v250_v50 = vpack.c.bf16 %v239_v44, %v238_v43 }
  0x1c   :  { %1422 = vmatpush3.bf16.msra.mxu1 %v260_v11  ;;  %1400 = vmatpush3.bf16.msra.mxu0 %v83_v22  ;;  %v64_v51 = vld [vmem:[%s2260_s1 + $0x48] sm:$0xff]  ;;  %v553_v52 = vld [vmem:[%s2267_s8 + $0x40] sm:$0xff]  ;;  %v74_v54 = vpack.c.bf16 %v62_v47, %v61_v46  ;;  %v240_v55 = vld [vmem:[%s2261_s2 + $0x50] sm:$0xff] }
  0x1d   :  { %1471 = vmatprep.subr.bf16.mxu1 %v568_v37  ;;  %v554_v53 = vld [vmem:[%s2267_s8 + $0x48] sm:$0xff]  ;;  %v75_v56 = vpack.c.bf16 %v64_v51, %v63_v48  ;;  %v241_v58 = vld [vmem:[%s2261_s2 + $0x58] sm:$0xff]  ;;  %v551_v59 = vld [vmem:[%s2267_s8 + $0x30] sm:$0xff] }
  0x1e   :  { %v565_v57 = vpack.c.bf16 %v554_v53, %v553_v52  ;;  %v552_v60 = vld [vmem:[%s2267_s8 + $0x38] sm:$0xff]  ;;  %v242_v61 = vld [vmem:[%s2261_s2 + $0x60] sm:$0xff]  ;;  %v243_v62 = vld [vmem:[%s2261_s2 + $0x68] sm:$0xff]  ;;  %v251_v63 = vpack.c.bf16 %v241_v58, %v240_v55 }
  0x1f   :  { %1424 = vmatmul.mubr.msk.bf16.vlgmr.msra.gmra.mxu1 %vm270_vm0, %v247_v25  ;;  %1402 = vmatmul.mubr.msk.bf16.vlgmr.msra.gmra.mxu0 %vm92_vm1, %v72_v31  ;;  %v65_v0 = vld [vmem:[%s2260_s1 + $0x50] sm:$0xff]  ;;  %v66_v1 = vld [vmem:[%s2260_s1 + $0x58] sm:$0xff]  ;;  %v564_v2 = vpack.c.bf16 %v552_v60, %v551_v59  ;;  %v252_v3 = vpack.c.bf16 %v243_v62, %v242_v61  ;;  %v67_v4 = vld [vmem:[%s2260_s1 + $0x60] sm:$0xff] }
  0x20   :  { %1427 = vmatprep.mubr.msk.bf16.mxu1 %vm270_vm0, %v248_v28  ;;  %1472 = vmatpush3.bf16.msra.mxu1 %v568_v37  ;;  %v68_v5 = vld [vmem:[%s2260_s1 + $0x68] sm:$0xff]  ;;  %v76_v6 = vpack.c.bf16 %v66_v1, %v65_v0  ;;  %v244_v8 = vld [vmem:[%s2261_s2 + $0x70] sm:$0xff]  ;;  %v245_v9 = vld [vmem:[%s2261_s2 + $0x78] sm:$0xff] }
  0x21   :  { %1405 = vmatprep.mubr.msk.bf16.mxu0 %vm92_vm1, %v73_v36  ;;  %1473 = vmatprep.subr.bf16.mxu1 %v567_v40  ;;  %v77_v7 = vpack.c.bf16 %v68_v5, %v67_v4  ;;  %v253_v10 = vpack.c.bf16 %v245_v9, %v244_v8  ;;  %v69_v11 = vld [vmem:[%s2260_s1 + $0x70] sm:$0xff]  ;;  %v70_v12 = vld [vmem:[%s2260_s1 + $0x78] sm:$0xff]  ;;  %v549_v14 = vld [vmem:[%s2267_s8 + $0x20] sm:$0xff] }
  0x22   :  { %v78_v13 = vpack.c.bf16 %v70_v12, %v69_v11  ;;  %v550_v15 = vld [vmem:[%s2267_s8 + $0x28] sm:$0xff]  ;;  %v547_v17 = vld [vmem:[%s2267_s8 + $0x10] sm:$0xff]  ;;  %v548_v18 = vld [vmem:[%s2267_s8 + $0x18] sm:$0xff] }
  0x23   :  { %v563_v16 = vpack.c.bf16 %v550_v15, %v549_v14  ;;  %v562_v19 = vpack.c.bf16 %v548_v18, %v547_v17  ;;  %v545_v20 = vld [vmem:[%s2267_s8] sm:$0xff]  ;;  %v546_v21 = vld [vmem:[%s2267_s8 + $0x8] sm:$0xff]  ;;  %v430_v23 = vld [vmem:[%s2266_s7 + $0x70] sm:$0xff] }
  0x24   :  { %1474 = vmatpush3.bf16.msra.mxu1 %v567_v40  ;;  %v561_v22 = vpack.c.bf16 %v546_v21, %v545_v20  ;;  %v431_v24 = vld [vmem:[%s2266_s7 + $0x78] sm:$0xff]  ;;  %v428_v26 = vld [vmem:[%s2266_s7 + $0x60] sm:$0xff]  ;;  %v429_v27 = vld [vmem:[%s2266_s7 + $0x68] sm:$0xff] }
  0x25   :  { %1475 = vmatprep.subr.bf16.mxu1 %v566_v49  ;;  %v439_v25 = vpack.c.bf16 %v431_v24, %v430_v23  ;;  %v438_v28 = vpack.c.bf16 %v429_v27, %v428_v26  ;;  %v426_v29 = vld [vmem:[%s2266_s7 + $0x50] sm:$0xff]  ;;  %v427_v30 = vld [vmem:[%s2266_s7 + $0x58] sm:$0xff]  ;;  %v424_v32 = vld [vmem:[%s2266_s7 + $0x40] sm:$0xff] }
  0x26   :  { %v437_v31 = vpack.c.bf16 %v427_v30, %v426_v29  ;;  %v425_v33 = vld [vmem:[%s2266_s7 + $0x48] sm:$0xff]  ;;  %v422_v35 = vld [vmem:[%s2266_s7 + $0x30] sm:$0xff]  ;;  %v423_v36 = vld [vmem:[%s2266_s7 + $0x38] sm:$0xff] }
  0x27   :  { %1428 = vmatmul.mubr.msk.bf16.gmra.mxu1 %vm270_vm0, %v249_v45  ;;  %1406 = vmatmul.mubr.msk.bf16.gmra.mxu0 %vm92_vm1, %v74_v54  ;;  %v436_v34 = vpack.c.bf16 %v425_v33, %v424_v32  ;;  %v435_v37 = vpack.c.bf16 %v423_v36, %v422_v35  ;;  %v420_v38 = vld [vmem:[%s2266_s7 + $0x20] sm:$0xff]  ;;  %v421_v39 = vld [vmem:[%s2266_s7 + $0x28] sm:$0xff]  ;;  %v418_v41 = vld [vmem:[%s2266_s7 + $0x10] sm:$0xff] }
  0x28   :  { %1431 = vmatprep.mubr.msk.bf16.mxu1 %vm270_vm0, %v250_v50  ;;  %1476 = vmatpush3.bf16.msra.mxu1 %v566_v49  ;;  %v434_v40 = vpack.c.bf16 %v421_v39, %v420_v38  ;;  %v419_v42 = vld [vmem:[%s2266_s7 + $0x18] sm:$0xff]  ;;  %v416_v44 = vld [vmem:[%s2266_s7] sm:$0xff]  ;;  %v417_v45 = vld [vmem:[%s2266_s7 + $0x8] sm:$0xff]  ;;  %s1691_s7 = smov [#allocation7]  }
  0x29   :  { %1409 = vmatprep.mubr.msk.bf16.mxu0 %vm92_vm1, %v75_v56  ;;  %1477 = vmatprep.subr.bf16.mxu1 %v565_v57  ;;  %v433_v43 = vpack.c.bf16 %v419_v42, %v418_v41  ;;  %v432_v46 = vpack.c.bf16 %v417_v45, %v416_v44  ;;  %v1991_v48 = vld [vmem:[%s2265_s6] ss:$0 sm:$0xff]  ;;  %s1121_s1 = sshll.u32 %s1691_s7, 4  ;;  %s1122_s1 = int_to_ptr.vmem [resolvable:$true] %s1121_s1 }
  0x2a   :  { %1439 = vmatprep.subr.bf16.mxu0 %v439_v25  ;;  %v1996_v50 = vld [vmem:[%s2263_s4] ss:$0 sm:$0xff]  ;;  %s1600_s18 = scalar_lea.vmem %s1122_s1, 2048  ;;  %p1605_p6 = scmp.lt.s32.totalorder %s1122_s1, %s1122_s1 }
  0x2b   :  { %1440 = vmatpush3.bf16.msra.mxu0 %v439_v25  ;;  %p1601_p5 = scmp.ne.s32.totalorder %s1122_s1, %s1600_s18  ;;  %p1606_p7 = scmp.lt.s32.totalorder %s1600_s18, %s1600_s18 }
  0x2c   :  { %1478 = vmatpush3.bf16.msra.mxu1 %v565_v57  ;;  %1441 = vmatprep.subr.bf16.mxu0 %v438_v28 }
  0x2d   :  { %1479 = vmatprep.subr.bf16.mxu1 %v564_v2  ;;  %p1607_p8 = por %p1606_p7, %p1605_p6 }
  0x2f   :  { %1432 = vmatmul.mubr.msk.bf16.gmra.mxu1 %vm270_vm0, %v251_v63  ;;  %1410 = vmatmul.mubr.msk.bf16.gmra.mxu0 %vm92_vm1, %v76_v6  ;;  %p1608_p9 = pnand %p1607_p8, %p1601_p5 }
  0x30   :  { %1435 = vmatprep.mubr.msk.bf16.mxu1 %vm270_vm0, %v252_v3  ;;  %1480 = vmatpush3.bf16.msra.mxu1 %v564_v2 }
  0x31   :  { %1413 = vmatprep.mubr.msk.bf16.mxu0 %vm92_vm1, %v77_v7  ;;  %1481 = vmatprep.subr.bf16.mxu1 %v563_v16 }
  0x32   :  { %1442 = vmatpush3.bf16.msra.mxu0 %v438_v28 }
  0x33   :  { %1443 = vmatprep.subr.bf16.mxu0 %v437_v31 }
  0x34   :  { %1482 = vmatpush3.bf16.msra.mxu1 %v563_v16 }
  0x35   :  { %1483 = vmatprep.subr.bf16.mxu1 %v562_v19 }
  0x36   :  { %1444 = vmatpush3.bf16.msra.mxu0 %v437_v31 }
  0x37   :  { %1436 = vmatmul.mubr.msk.bf16.gmra.mxu1 %vm270_vm0, %v253_v10  ;;  %1414 = vmatmul.mubr.msk.bf16.gmra.mxu0 %vm92_vm1, %v78_v13 }
  0x38   :  { %1484 = vmatpush3.bf16.msra.mxu1 %v562_v19  ;;  %1445 = vmatprep.subr.bf16.mxu0 %v436_v34 }
  0x39   :  { %1485 = vmatprep.subr.bf16.mxu1 %v561_v22 }
  0x3a   :  { %1446 = vmatpush3.bf16.msra.mxu0 %v436_v34 }
  0x3b   :  { %1447 = vmatprep.subr.bf16.mxu0 %v435_v37 }
  0x3c   :  { %1486 = vmatpush3.bf16.msra.mxu1 %v561_v22 }
  0x3e   :  { %1448 = vmatpush3.bf16.msra.mxu0 %v435_v37 }
  0x3f   :  { %1449 = vmatprep.subr.bf16.mxu0 %v434_v40 }
  0x42   :  { %1450 = vmatpush3.bf16.msra.mxu0 %v434_v40 }
  0x43   :  { %1451 = vmatprep.subr.bf16.mxu0 %v433_v43 }
  0x46   :  { %1452 = vmatpush3.bf16.msra.mxu0 %v433_v43 }
  0x47   :  { %1453 = vmatprep.subr.bf16.mxu0 %v432_v46 }
  0x4a   :  { %1454 = vmatpush3.bf16.msra.mxu0 %v432_v46 }
  0xdf   :  { %v1425_v47 = vpop.f32.mrf.mxu1  ;;  %v1403_v51 = vpop.f32.mrf.mxu0 }
  0xe0   :  { %v338_v53 = vadd.f32 %v1425_v47, %v1991_v48  ;;  %v160_v56 = vadd.f32 %v1403_v51, %v1996_v50 }
  0xe1   :  { %v329_v49 = vpop.f32.mrf.mxu1  ;;  %v151_v57 = vpop.f32.mrf.mxu0 }
  0xe2   :  { %v330_v54 = vadd.f32 %v1991_v48, %v329_v49  ;;  %v152_v59 = vadd.f32 %v1996_v50, %v151_v57  ;;  %v394_v1 = vmax.f32 %v338_v53, 0.0  ;;  %v216_v4 = vmax.f32 %v160_v56, 0.0 }
  0xe3   :  { %v1426_v52 = vpop.f32.mrf.mxu1  ;;  %v1404_v61 = vpop.f32.mrf.mxu0 }
  0xe4   :  { %v341_v55 = vadd.f32 %v1426_v52, %v1991_v48  ;;  %v163_v0 = vadd.f32 %v1404_v61, %v1996_v50  ;;  %v392_v2 = vmax.f32 %v330_v54, 0.0  ;;  %v214_v8 = vmax.f32 %v152_v59, 0.0 }
  0xe5   :  { %v332_v58 = vpop.f32.mrf.mxu1  ;;  %v154_v5 = vpop.f32.mrf.mxu0 }
  0xe6   :  { %v333_v60 = vadd.f32 %v1991_v48, %v332_v58  ;;  %v395_v62 = vmax.f32 %v341_v55, 0.0  ;;  %v217_v9 = vmax.f32 %v163_v0, 0.0  ;;  %v155_v10 = vadd.f32 %v1996_v50, %v154_v5 }
  0xe7   :  { %v1429_v63 = vpop.f32.mrf.mxu1  ;;  %v1407_v13 = vpop.f32.mrf.mxu0 }
  0xe8   :  { %v393_v3 = vmax.f32 %v333_v60, 0.0  ;;  %v354_v6 = vadd.f32 %v1429_v63, %v1991_v48  ;;  %v538_v14 = vpack.c.bf16 %v395_v62, %v394_v1  ;;  %v215_v16 = vmax.f32 %v155_v10, 0.0 }
  0xe9   :  { %v345_v7 = vpop.f32.mrf.mxu1  ;;  %v409_v18 = vpack.c.bf16 %v217_v9, %v216_v4  ;;  %v176_v19 = vadd.f32 %v1407_v13, %v1996_v50  ;;  %v167_v20 = vpop.f32.mrf.mxu0 }
  0xea   :  { %v537_v11 = vpack.c.bf16 %v393_v3, %v392_v2  ;;  %v346_v12 = vadd.f32 %v1991_v48, %v345_v7  ;;  %v398_v21 = vmax.f32 %v354_v6, 0.0  ;;  %v408_v23 = vpack.c.bf16 %v215_v16, %v214_v8 }
  0xeb   :  { %v1430_v15 = vpop.f32.mrf.mxu1  ;;  %v168_v24 = vadd.f32 %v1996_v50, %v167_v20  ;;  %v1408_v28 = vpop.f32.mrf.mxu0  ;;  %v220_v32 = vmax.f32 %v176_v19, 0.0 }
  0xec   :  { %v357_v17 = vadd.f32 %v1430_v15, %v1991_v48  ;;  %1487 = vmatprep.mubr.bf16.mxu1 %v537_v11  ;;  %v396_v25 = vmax.f32 %v346_v12, 0.0  ;;  %v179_v30 = vadd.f32 %v1408_v28, %v1996_v50  ;;  %1455 = vmatprep.mubr.bf16.mxu0 %v408_v23 }
  0xed   :  { %v348_v22 = vpop.f32.mrf.mxu1  ;;  %1488 = vmatmul.mubr.bf16.vlgmr.msra.gmra.mxu1 %v538_v14  ;;  %v218_v33 = vmax.f32 %v168_v24, 0.0  ;;  %v170_v34 = vpop.f32.mrf.mxu0  ;;  %1456 = vmatmul.mubr.bf16.vlgmr.msra.gmra.mxu0 %v409_v18 }
  0xee   :  { %v399_v26 = vmax.f32 %v357_v17, 0.0  ;;  %v349_v27 = vadd.f32 %v1991_v48, %v348_v22  ;;  %v221_v38 = vmax.f32 %v179_v30, 0.0  ;;  %v171_v39 = vadd.f32 %v1996_v50, %v170_v34 }
  0xef   :  { %v1433_v29 = vpop.f32.mrf.mxu1  ;;  %v1411_v42 = vpop.f32.mrf.mxu0 }
  0xf0   :  { %v397_v31 = vmax.f32 %v349_v27, 0.0  ;;  %v540_v35 = vpack.c.bf16 %v399_v26, %v398_v21  ;;  %v370_v36 = vadd.f32 %v1433_v29, %v1991_v48  ;;  %v219_v44 = vmax.f32 %v171_v39, 0.0 }
  0xf1   :  { %v361_v37 = vpop.f32.mrf.mxu1  ;;  %v411_v46 = vpack.c.bf16 %v221_v38, %v220_v32  ;;  %v192_v47 = vadd.f32 %v1411_v42, %v1996_v50  ;;  %v183_v49 = vpop.f32.mrf.mxu0 }
  0xf2   :  { %v539_v40 = vpack.c.bf16 %v397_v31, %v396_v25  ;;  %v362_v41 = vadd.f32 %v1991_v48, %v361_v37  ;;  %v402_v51 = vmax.f32 %v370_v36, 0.0  ;;  %v410_v53 = vpack.c.bf16 %v219_v44, %v218_v33 }
  0xf3   :  { %v1434_v43 = vpop.f32.mrf.mxu1  ;;  %v184_v54 = vadd.f32 %v1996_v50, %v183_v49  ;;  %v1412_v58 = vpop.f32.mrf.mxu0  ;;  %v224_v62 = vmax.f32 %v192_v47, 0.0 }
  0xf4   :  { %v373_v45 = vadd.f32 %v1434_v43, %v1991_v48  ;;  %1491 = vmatprep.mubr.bf16.mxu1 %v539_v40  ;;  %v400_v55 = vmax.f32 %v362_v41, 0.0  ;;  %v195_v60 = vadd.f32 %v1412_v58, %v1996_v50  ;;  %1459 = vmatprep.mubr.bf16.mxu0 %v410_v53 }
  0xf5   :  { %v364_v52 = vpop.f32.mrf.mxu1  ;;  %1492 = vmatmul.mubr.bf16.gmra.mxu1 %v540_v35  ;;  %v222_v63 = vmax.f32 %v184_v54, 0.0  ;;  %v186_v0 = vpop.f32.mrf.mxu0  ;;  %1460 = vmatmul.mubr.bf16.gmra.mxu0 %v411_v46 }
  0xf6   :  { %v403_v56 = vmax.f32 %v373_v45, 0.0  ;;  %v365_v57 = vadd.f32 %v1991_v48, %v364_v52  ;;  %v225_v4 = vmax.f32 %v195_v60, 0.0  ;;  %v187_v5 = vadd.f32 %v1996_v50, %v186_v0 }
  0xf7   :  { %v1437_v59 = vpop.f32.mrf.mxu1  ;;  %v1415_v8 = vpop.f32.mrf.mxu0 }
  0xf8   :  { %v401_v61 = vmax.f32 %v365_v57, 0.0  ;;  %v542_v1 = vpack.c.bf16 %v403_v56, %v402_v51  ;;  %v386_v2 = vadd.f32 %v1437_v59, %v1991_v48  ;;  %v223_v10 = vmax.f32 %v187_v5, 0.0 }
  0xf9   :  { %v377_v3 = vpop.f32.mrf.mxu1  ;;  %v413_v12 = vpack.c.bf16 %v225_v4, %v224_v62  ;;  %v208_v13 = vadd.f32 %v1415_v8, %v1996_v50  ;;  %v199_v14 = vpop.f32.mrf.mxu0 }
  0xfa   :  { %v541_v6 = vpack.c.bf16 %v401_v61, %v400_v55  ;;  %v378_v7 = vadd.f32 %v1991_v48, %v377_v3  ;;  %v406_v15 = vmax.f32 %v386_v2, 0.0  ;;  %v412_v17 = vpack.c.bf16 %v223_v10, %v222_v63 }
  0xfb   :  { %v1438_v9 = vpop.f32.mrf.mxu1  ;;  %v200_v18 = vadd.f32 %v1996_v50, %v199_v14  ;;  %v1416_v22 = vpop.f32.mrf.mxu0  ;;  %v228_v25 = vmax.f32 %v208_v13, 0.0 }
  0xfc   :  { %v389_v11 = vadd.f32 %v1438_v9, %v1991_v48  ;;  %1495 = vmatprep.mubr.bf16.mxu1 %v541_v6  ;;  %v404_v19 = vmax.f32 %v378_v7, 0.0  ;;  %v211_v23 = vadd.f32 %v1416_v22, %v1996_v50  ;;  %1463 = vmatprep.mubr.bf16.mxu0 %v412_v17 }
  0xfd   :  { %v380_v16 = vpop.f32.mrf.mxu1  ;;  %1496 = vmatmul.mubr.bf16.gmra.mxu1 %v542_v1  ;;  %v202_v26 = vpop.f32.mrf.mxu0  ;;  %1464 = vmatmul.mubr.bf16.gmra.mxu0 %v413_v12  ;;  %v226_v28 = vmax.f32 %v200_v18, 0.0 }
  0xfe   :  { %v407_v20 = vmax.f32 %v389_v11, 0.0  ;;  %v381_v21 = vadd.f32 %v1991_v48, %v380_v16  ;;  %v229_v29 = vmax.f32 %v211_v23, 0.0  ;;  %v203_v30 = vadd.f32 %v1996_v50, %v202_v26 }
  0xff   :  { %v667_v48 = vstv %s2259_s0 }
 0x100   :  { %v405_v24 = vmax.f32 %v381_v21, 0.0  ;;  %v544_v27 = vpack.c.bf16 %v407_v20, %v406_v15  ;;  %v227_v32 = vmax.f32 %v203_v30, 0.0  ;;  %v415_v33 = vpack.c.bf16 %v229_v29, %v228_v25 }
 0x101   :  { %v668_v35 = vmul.f32 1.442695, %v667_v48 }
 0x102   :  { %v543_v31 = vpack.c.bf16 %v405_v24, %v404_v19  ;;  %v414_v34 = vpack.c.bf16 %v227_v32, %v226_v28 }
 0x103   :  { %1514 = vpow2.f32 %v668_v35 }
 0x104   :  { %1499 = vmatprep.mubr.bf16.mxu1 %v543_v31  ;;  %1467 = vmatprep.mubr.bf16.mxu0 %v414_v34 }
 0x105   :  { %1500 = vmatmul.mubr.bf16.gmra.mxu1 %v544_v27  ;;  %1468 = vmatmul.mubr.bf16.gmra.mxu0 %v415_v33 }
 0x110   :  { %v1515_v53 = vpop.eup %1514 }
 0x111   :  { %1503 = vpush %v1515_v53 }
 0x142   :  { %s1504_s0 = spop %1503 }
 0x1ad   :  { %v2033_v36 = vpop.f32.mrf.mxu1  ;;  %v2041_v39 = vpop.f32.mrf.mxu0 }
 0x1ae   :  { %v721_v37 = vmul.f32 %v2033_v36, %v2033_v36  ;;  %v673_v17 = vmul.f32 %v2041_v39, %v2041_v39 }
 0x1af   :  { %v2037_v50 = vpop.f32.mrf.mxu1  ;;  %v2047_v42 = vpop.f32.mrf.mxu0 }
 0x1b0   :  { %739 = vadd.xlane.f32.xlu1 %v721_v37  ;;  %v719_v38 = vmul.f32 %v2037_v50, %v2037_v50  ;;  %v671_v15 = vmul.f32 %v2047_v42, %v2047_v42 }
 0x1b1   :  { %v2043_v40 = vpop.f32.mrf.mxu1  ;;  %v2053_v45 = vpop.f32.mrf.mxu0 }
 0x1b2   :  { %735 = vadd.xlane.f32.xlu0 %v719_v38  ;;  %v722_v41 = vmul.f32 %v2043_v40, %v2043_v40  ;;  %v674_v20 = vmul.f32 %v2053_v45, %v2053_v45 }
 0x1b3   :  { %v2049_v43 = vpop.f32.mrf.mxu1  ;;  %v2059_v49 = vpop.f32.mrf.mxu0 }
 0x1b4   :  { %741 = vadd.xlane.f32.xlu1 %v722_v41  ;;  %v720_v44 = vmul.f32 %v2049_v43, %v2049_v43  ;;  %v672_v18 = vmul.f32 %v2059_v49, %v2059_v49 }
 0x1b5   :  { %v2055_v46 = vpop.f32.mrf.mxu1  ;;  %v2067_v55 = vpop.f32.mrf.mxu0 }
 0x1b6   :  { %737 = vadd.xlane.f32.xlu0 %v720_v44  ;;  %v725_v51 = vmul.f32 %v2055_v46, %v2055_v46  ;;  %v677_v23 = vmul.f32 %v2067_v55, %v2067_v55 }
 0x1b7   :  { %v2057_v47 = vpop.f32.mrf.mxu1  ;;  %v2079_v61 = vpop.f32.mrf.mxu0 }
 0x1b8   :  { %v723_v56 = vmul.f32 %v2057_v47, %v2057_v47  ;;  %v675_v21 = vmul.f32 %v2079_v61, %v2079_v61 }
 0x1b9   :  { %v2063_v52 = vpop.f32.mrf.mxu1  ;;  %v2089_v2 = vpop.f32.mrf.mxu0 }
 0x1ba   :  { %747 = vadd.xlane.f32.xlu0 %v725_v51  ;;  %v726_v62 = vmul.f32 %v2063_v52, %v2063_v52  ;;  %v678_v26 = vmul.f32 %v2089_v2, %v2089_v2 }
 0x1bb   :  { %v2065_v54 = vpop.f32.mrf.mxu1  ;;  %v2099_v7 = vpop.f32.mrf.mxu0 }
 0x1bc   :  { %v724_v57 = vmul.f32 %v2065_v54, %v2065_v54  ;;  %v676_v24 = vmul.f32 %v2099_v7, %v2099_v7 }
 0x1bd   :  { %v2073_v58 = vpop.f32.mrf.mxu1  ;;  %v2109_v12 = vpop.f32.mrf.mxu0 }
 0x1be   :  { %743 = vadd.xlane.f32.xlu0 %v723_v56  ;;  %745 = vadd.xlane.f32.xlu1 %v724_v57  ;;  %v729_v59 = vmul.f32 %v2073_v58, %v2073_v58  ;;  %v681_v29 = vmul.f32 %v2109_v12, %v2109_v12 }
 0x1bf   :  { %v2077_v60 = vpop.f32.mrf.mxu1  ;;  %v2117_v16 = vpop.f32.mrf.mxu0 }
 0x1c0   :  { %v727_v0 = vmul.f32 %v2077_v60, %v2077_v60  ;;  %v679_v27 = vmul.f32 %v2117_v16, %v2117_v16 }
 0x1c1   :  { %v2083_v63 = vpop.f32.mrf.mxu1  ;;  %v2123_v19 = vpop.f32.mrf.mxu0 }
 0x1c2   :  { %749 = vadd.xlane.f32.xlu1 %v726_v62  ;;  %755 = vadd.xlane.f32.xlu0 %v729_v59  ;;  %v730_v8 = vmul.f32 %v2083_v63, %v2083_v63  ;;  %v682_v32 = vmul.f32 %v2123_v19, %v2123_v19 }
 0x1c3   :  { %v2087_v1 = vpop.f32.mrf.mxu1  ;;  %v2129_v22 = vpop.f32.mrf.mxu0 }
 0x1c4   :  { %v728_v3 = vmul.f32 %v2087_v1, %v2087_v1  ;;  %v680_v30 = vmul.f32 %v2129_v22, %v2129_v22 }
 0x1c5   :  { %v2093_v4 = vpop.f32.mrf.mxu1  ;;  %v2135_v25 = vpop.f32.mrf.mxu0 }
 0x1c6   :  { %751 = vadd.xlane.f32.xlu0 %v727_v0  ;;  %753 = vadd.xlane.f32.xlu1 %v728_v3  ;;  %v733_v5 = vmul.f32 %v2093_v4, %v2093_v4  ;;  %v685_v35 = vmul.f32 %v2135_v25, %v2135_v25 }
 0x1c7   :  { %v2097_v6 = vpop.f32.mrf.mxu1  ;;  %v2141_v28 = vpop.f32.mrf.mxu0 }
 0x1c8   :  { %v731_v10 = vmul.f32 %v2097_v6, %v2097_v6  ;;  %v683_v33 = vmul.f32 %v2141_v28, %v2141_v28 }
 0x1c9   :  { %v2103_v9 = vpop.f32.mrf.mxu1  ;;  %v2147_v31 = vpop.f32.mrf.mxu0 }
 0x1ca   :  { %757 = vadd.xlane.f32.xlu1 %v730_v8  ;;  %763 = vadd.xlane.f32.xlu0 %v733_v5  ;;  %v734_v14 = vmul.f32 %v2103_v9, %v2103_v9  ;;  %v686_v37 = vmul.f32 %v2147_v31, %v2147_v31 }
 0x1cb   :  { %v2107_v11 = vpop.f32.mrf.mxu1  ;;  %v2153_v34 = vpop.f32.mrf.mxu0 }
 0x1cc   :  { %v732_v13 = vmul.f32 %v2107_v11, %v2107_v11  ;;  %v684_v48 = vmul.f32 %v2153_v34, %v2153_v34 }
 0x1ce   :  { %759 = vadd.xlane.f32.xlu0 %v731_v10  ;;  %761 = vadd.xlane.f32.xlu1 %v732_v13 }
 0x1d2   :  { %765 = vadd.xlane.f32.xlu1 %v734_v14  ;;  %687 = vadd.xlane.f32.xlu0 %v671_v15 }
 0x1d6   :  { %691 = vadd.xlane.f32.xlu0 %v673_v17  ;;  %689 = vadd.xlane.f32.xlu1 %v672_v18 }
 0x1da   :  { %693 = vadd.xlane.f32.xlu1 %v674_v20  ;;  %695 = vadd.xlane.f32.xlu0 %v675_v21 }
 0x1de   :  { %699 = vadd.xlane.f32.xlu0 %v677_v23  ;;  %697 = vadd.xlane.f32.xlu1 %v676_v24 }
 0x1e2   :  { %701 = vadd.xlane.f32.xlu1 %v678_v26  ;;  %703 = vadd.xlane.f32.xlu0 %v679_v27 }
 0x1e6   :  { %707 = vadd.xlane.f32.xlu0 %v681_v29  ;;  %705 = vadd.xlane.f32.xlu1 %v680_v30 }
 0x1ea   :  { %709 = vadd.xlane.f32.xlu1 %v682_v32  ;;  %711 = vadd.xlane.f32.xlu0 %v683_v33 }
 0x1ee   :  { %715 = vadd.xlane.f32.xlu0 %v685_v35  ;;  %713 = vadd.xlane.f32.xlu1 %v684_v48 }
 0x1f2   :  { %717 = vadd.xlane.f32.xlu1 %v686_v37 }
 0x239   :  { %v740_v38 = vpop.xlane.xlu1 %739 }
 0x23a   :  { %v817_v41 = vmax.f32 %v740_v38, 1e-24 }
 0x23b   :  { %v736_v44 = vpop.xlane.xlu0 %735 }
 0x23c   :  { %1516 = vrsqrt.f32 %v817_v41  ;;  %v815_v51 = vmax.f32 %v736_v44, 1e-24 }
 0x23d   :  { %v742_v53 = vpop.xlane.xlu1 %741 }
 0x23e   :  { %1518 = vrsqrt.f32 %v815_v51  ;;  %v818_v56 = vmax.f32 %v742_v53, 1e-24 }
 0x23f   :  { %v738_v57 = vpop.xlane.xlu0 %737 }
 0x240   :  { %1520 = vrsqrt.f32 %v818_v56  ;;  %v816_v59 = vmax.f32 %v738_v57, 1e-24 }
 0x242   :  { %1522 = vrsqrt.f32 %v816_v59 }
 0x243   :  { %v748_v62 = vpop.xlane.xlu0 %747 }
 0x244   :  { %v821_v0 = vmax.f32 %v748_v62, 1e-24 }
 0x246   :  { %1524 = vrsqrt.f32 %v821_v0 }
 0x247   :  { %v744_v3 = vpop.xlane.xlu0 %743  ;;  %v746_v5 = vpop.xlane.xlu1 %745 }
 0x248   :  { %v819_v8 = vmax.f32 %v744_v3, 1e-24  ;;  %v820_v10 = vmax.f32 %v746_v5, 1e-24 }
 0x249   :  { %v1517_v13 = vpop.eup %1516 }
 0x24a   :  { %1526 = vrsqrt.f32 %v819_v8  ;;  %v849_v14 = vmul.f32 %v1517_v13, %v2033_v36 }
 0x24b   :  { %v1519_v15 = vpop.eup %1518  ;;  %1528 = vrsqrt.f32 %v820_v10  ;;  %v750_v17 = vpop.xlane.xlu1 %749 }
 0x24c   :  { %v756_v18 = vpop.xlane.xlu0 %755  ;;  %v822_v20 = vmax.f32 %v750_v17, 1e-24  ;;  %v847_v23 = vmul.f32 %v1519_v15, %v2037_v50  ;;  %881 = vst [vmem:[#allocation7 + $0x10] sm:$0xff] %v849_v14 }
 0x24d   :  { %v825_v21 = vmax.f32 %v756_v18, 1e-24  ;;  %v1521_v24 = vpop.eup %1520 }
 0x24e   :  { %1530 = vrsqrt.f32 %v822_v20  ;;  %879 = vst [vmem:[#allocation7] sm:$0xff] %v847_v23  ;;  %992 = vxpose.xlu0.b32.start [1/16] %v847_v23, 128  ;;  %v850_v26 = vmul.f32 %v1521_v24, %v2043_v40 }
 0x24f   :  { %v1523_v27 = vpop.eup %1522  ;;  %1532 = vrsqrt.f32 %v825_v21  ;;  %v754_v30 = vpop.xlane.xlu1 %753 }
 0x250   :  { %v752_v29 = vpop.xlane.xlu0 %751  ;;  %v824_v32 = vmax.f32 %v754_v30, 1e-24  ;;  %v848_v33 = vmul.f32 %v1523_v27, %v2049_v43  ;;  %882 = vst [vmem:[#allocation7 + $0x18] sm:$0xff] %v850_v26 }
 0x251   :  { %v823_v36 = vmax.f32 %v752_v29, 1e-24 }
 0x252   :  { %880 = vst [vmem:[#allocation7 + $0x8] sm:$0xff] %v848_v33  ;;  %993 = vxpose.xlu0.b32.cont [2/16] %v848_v33, 128 }
 0x253   :  { %1534 = vrsqrt.f32 %v823_v36  ;;  %v1525_v50 = vpop.eup %1524  ;;  %v758_v48 = vpop.xlane.xlu1 %757 }
 0x254   :  { %1536 = vrsqrt.f32 %v824_v32  ;;  %v764_v35 = vpop.xlane.xlu0 %763  ;;  %v826_v37 = vmax.f32 %v758_v48, 1e-24  ;;  %v853_v40 = vmul.f32 %v1525_v50, %v2055_v46 }
 0x255   :  { %v829_v38 = vmax.f32 %v764_v35, 1e-24 }
 0x256   :  { %1538 = vrsqrt.f32 %v826_v37  ;;  %994 = vxpose.xlu0.b32.cont [3/16] %v849_v14, 128  ;;  %885 = vst [vmem:[#allocation7 + $0x30] sm:$0xff] %v853_v40 }
 0x257   :  { %v1527_v41 = vpop.eup %1526  ;;  %1540 = vrsqrt.f32 %v829_v38  ;;  %v762_v51 = vpop.xlane.xlu1 %761 }
 0x258   :  { %v760_v44 = vpop.xlane.xlu0 %759  ;;  %v1529_v43 = vpop.eup %1528  ;;  %v828_v56 = vmax.f32 %v762_v51, 1e-24  ;;  %v851_v57 = vmul.f32 %v1527_v41, %v2057_v47 }
 0x259   :  { %v827_v53 = vmax.f32 %v760_v44, 1e-24  ;;  %v852_v59 = vmul.f32 %v1529_v43, %v2065_v54 }
 0x25a   :  { %995 = vxpose.xlu0.b32.cont [4/16] %v850_v26, 128  ;;  %883 = vst [vmem:[#allocation7 + $0x20] sm:$0xff] %v851_v57 }
 0x25b   :  { %1542 = vrsqrt.f32 %v827_v53  ;;  %v1531_v62 = vpop.eup %1530  ;;  %v766_v46 = vpop.xlane.xlu1 %765  ;;  %884 = vst [vmem:[#allocation7 + $0x28] sm:$0xff] %v852_v59 }
 0x25c   :  { %1544 = vrsqrt.f32 %v828_v56  ;;  %v688_v0 = vpop.xlane.xlu0 %687  ;;  %v1533_v3 = vpop.eup %1532  ;;  %v830_v5 = vmax.f32 %v766_v46, 1e-24  ;;  %v854_v10 = vmul.f32 %v1531_v62, %v2063_v52 }
 0x25d   :  { %v767_v8 = vmax.f32 %v688_v0, 1e-24  ;;  %v2170_v13 = vmul.f32 %v1533_v3, %v2073_v58 }
 0x25e   :  { %1546 = vrsqrt.f32 %v830_v5  ;;  %996 = vxpose.xlu0.b32.cont [5/16] %v851_v57, 128  ;;  %886 = vst [vmem:[#allocation7 + $0x38] sm:$0xff] %v854_v10  ;;  %v2197_v57 = vstv %s1504_s0 }
 0x25f   :  { %1548 = vrsqrt.f32 %v767_v8  ;;  %v690_v14 = vpop.xlane.xlu1 %689  ;;  %889 = vst [vmem:[#allocation7 + $0x50] sm:$0xff] %v2170_v13 }
 0x260   :  { %v1535_v47 = vpop.eup %1534  ;;  %v692_v54 = vpop.xlane.xlu0 %691  ;;  %v768_v18 = vmax.f32 %v690_v14, 1e-24 }
 0x261   :  { %v1537_v15 = vpop.eup %1536  ;;  %v769_v17 = vmax.f32 %v692_v54, 1e-24  ;;  %v855_v20 = vmul.f32 %v1535_v47, %v2077_v60 }
 0x262   :  { %v856_v21 = vmul.f32 %v1537_v15, %v2087_v1  ;;  %997 = vxpose.xlu0.b32.cont [6/16] %v852_v59, 128 }
 0x263   :  { %1550 = vrsqrt.f32 %v769_v17  ;;  %887 = vst [vmem:[#allocation7 + $0x40] sm:$0xff] %v855_v20  ;;  %v1539_v52 = vpop.eup %1538  ;;  %v694_v58 = vpop.xlane.xlu1 %693 }
 0x264   :  { %1552 = vrsqrt.f32 %v768_v18  ;;  %v696_v23 = vpop.xlane.xlu0 %695  ;;  %888 = vst [vmem:[#allocation7 + $0x48] sm:$0xff] %v856_v21  ;;  %v1541_v24 = vpop.eup %1540  ;;  %v770_v26 = vmax.f32 %v694_v58, 1e-24  ;;  %v2176_v29 = vmul.f32 %v1539_v52, %v2083_v63 }
 0x265   :  { %v771_v27 = vmax.f32 %v696_v23, 1e-24  ;;  %v2179_v30 = vmul.f32 %v1541_v24, %v2093_v4 }
 0x266   :  { %1554 = vrsqrt.f32 %v770_v26  ;;  %998 = vxpose.xlu0.b32.cont [7/16] %v853_v40, 128  ;;  %890 = vst [vmem:[#allocation7 + $0x58] sm:$0xff] %v2176_v29 }
 0x267   :  { %1556 = vrsqrt.f32 %v771_v27  ;;  %v698_v36 = vpop.xlane.xlu1 %697  ;;  %893 = vst [vmem:[#allocation7 + $0x70] sm:$0xff] %v2179_v30 }
 0x268   :  { %v1543_v60 = vpop.eup %1542  ;;  %v700_v1 = vpop.xlane.xlu0 %699  ;;  %v772_v50 = vmax.f32 %v698_v36, 1e-24 }
 0x269   :  { %v1545_v32 = vpop.eup %1544  ;;  %v773_v33 = vmax.f32 %v700_v1, 1e-24  ;;  %v2184_v48 = vmul.f32 %v1543_v60, %v2097_v6 }
 0x26a   :  { %v2187_v63 = vmul.f32 %v1545_v32, %v2107_v11  ;;  %999 = vxpose.xlu0.b32.cont [8/16] %v854_v10, 128 }
 0x26b   :  { %1558 = vrsqrt.f32 %v773_v33  ;;  %891 = vst [vmem:[#allocation7 + $0x60] sm:$0xff] %v2184_v48  ;;  %v1547_v4 = vpop.eup %1546  ;;  %v702_v35 = vpop.xlane.xlu1 %701 }
 0x26c   :  { %1560 = vrsqrt.f32 %v772_v50  ;;  %v704_v37 = vpop.xlane.xlu0 %703  ;;  %892 = vst [vmem:[#allocation7 + $0x68] sm:$0xff] %v2187_v63  ;;  %v1549_v38 = vpop.eup %1548  ;;  %v774_v40 = vmax.f32 %v702_v35, 1e-24  ;;  %v2192_v44 = vmul.f32 %v1547_v4, %v2103_v9 }
 0x26d   :  { %v775_v41 = vmax.f32 %v704_v37, 1e-24  ;;  %v799_v6 = vmul.f32 %v1549_v38, %v2047_v42 }
 0x26e   :  { %1562 = vrsqrt.f32 %v774_v40  ;;  %1000 = vxpose.xlu0.b32.cont [9/16] %v855_v20, 128  ;;  %894 = vst [vmem:[#allocation7 + $0x78] sm:$0xff] %v2192_v44 }
 0x26f   :  { %863 = vst [vmem:[#allocation6] sm:$0xff] %v799_v6  ;;  %1564 = vrsqrt.f32 %v775_v41  ;;  %v706_v43 = vpop.xlane.xlu1 %705  ;;  %v896_v3 = vmul.f32 %v2197_v57, %v799_v6 }
 0x270   :  { %v1551_v11 = vpop.eup %1550  ;;  %v708_v51 = vpop.xlane.xlu0 %707  ;;  %v776_v9 = vmax.f32 %v706_v43, 1e-24 }
 0x271   :  { %v1553_v53 = vpop.eup %1552  ;;  %v801_v56 = vmul.f32 %v1551_v11, %v2041_v39  ;;  %v777_v59 = vmax.f32 %v708_v51, 1e-24 }
 0x272   :  { %v800_v62 = vmul.f32 %v1553_v53, %v2059_v49  ;;  %1001 = vxpose.xlu0.b32.cont [10/16] %v856_v21, 128 }
 0x273   :  { %865 = vst [vmem:[#allocation6 + $0x10] sm:$0xff] %v801_v56  ;;  %1566 = vrsqrt.f32 %v777_v59  ;;  %v1555_v42 = vpop.eup %1554  ;;  %v710_v46 = vpop.xlane.xlu1 %709  ;;  %v898_v14 = vmul.f32 %v2197_v57, %v801_v56 }
 0x274   :  { %864 = vst [vmem:[#allocation6 + $0x8] sm:$0xff] %v800_v62  ;;  %1568 = vrsqrt.f32 %v776_v9  ;;  %v712_v0 = vpop.xlane.xlu0 %711  ;;  %v897_v5 = vmul.f32 %v2197_v57, %v800_v62  ;;  %v1557_v8 = vpop.eup %1556  ;;  %v802_v39 = vmul.f32 %v1555_v42, %v2053_v45  ;;  %v778_v10 = vmax.f32 %v710_v46, 1e-24 }
 0x275   :  { %v779_v47 = vmax.f32 %v712_v0, 1e-24  ;;  %v803_v54 = vmul.f32 %v1557_v8, %v2079_v61 }
 0x276   :  { %v1253_v49 = vpack.c.bf16 %v897_v5, %v896_v3  ;;  %866 = vst [vmem:[#allocation6 + $0x18] sm:$0xff] %v802_v39  ;;  %1570 = vrsqrt.f32 %v778_v10  ;;  %1002 = vxpose.xlu0.b32.cont [11/16] %v2170_v13, 128  ;;  %v899_v15 = vmul.f32 %v2197_v57, %v802_v39 }
 0x277   :  { %867 = vst [vmem:[#allocation6 + $0x20] sm:$0xff] %v803_v54  ;;  %1572 = vrsqrt.f32 %v779_v47  ;;  %v714_v20 = vpop.xlane.xlu1 %713  ;;  %v900_v26 = vmul.f32 %v2197_v57, %v803_v54 }
 0x278   :  { %v1559_v17 = vpop.eup %1558  ;;  %v716_v18 = vpop.xlane.xlu0 %715  ;;  %1254 = vst [vmem:[#allocation9] sm:$0xff] %v1253_v49   ;;  %v780_v61 = vmax.f32 %v714_v20, 1e-24  ;;  %v1258_v58 = vpack.c.bf16 %v899_v15, %v898_v14 }
 0x279   :  { %v1561_v45 = vpop.eup %1560  ;;  %v805_v21 = vmul.f32 %v1559_v17, %v2067_v55  ;;  %v781_v52 = vmax.f32 %v716_v18, 1e-24 }
 0x27a   :  { %v804_v23 = vmul.f32 %v1561_v45, %v2099_v7  ;;  %1003 = vxpose.xlu0.b32.cont [12/16] %v2176_v29, 128  ;;  %1330 = vst [vmem:[#allocation9 + $0x8] sm:$0xff] %v1258_v58  }
 0x27b   :  { %869 = vst [vmem:[#allocation6 + $0x30] sm:$0xff] %v805_v21  ;;  %1574 = vrsqrt.f32 %v781_v52  ;;  %v1563_v13 = vpop.eup %1562  ;;  %v718_v24 = vpop.xlane.xlu1 %717  ;;  %v902_v29 = vmul.f32 %v2197_v57, %v805_v21 }
 0x27c   :  { %868 = vst [vmem:[#allocation6 + $0x28] sm:$0xff] %v804_v23  ;;  %1576 = vrsqrt.f32 %v780_v61  ;;  %v901_v27 = vmul.f32 %v2197_v57, %v804_v23  ;;  %v1565_v60 = vpop.eup %1564  ;;  %v806_v55 = vmul.f32 %v1563_v13, %v2089_v2  ;;  %v782_v1 = vmax.f32 %v718_v24, 1e-24 }
 0x27d   :  { %v807_v36 = vmul.f32 %v1565_v60, %v2117_v16 }
 0x27e   :  { %v1263_v7 = vpack.c.bf16 %v901_v27, %v900_v26  ;;  %870 = vst [vmem:[#allocation6 + $0x38] sm:$0xff] %v806_v55  ;;  %1578 = vrsqrt.f32 %v782_v1  ;;  %1004 = vxpose.xlu0.b32.cont [13/16] %v2184_v48, 128  ;;  %v903_v32 = vmul.f32 %v2197_v57, %v806_v55 }
 0x27f   :  { %871 = vst [vmem:[#allocation6 + $0x40] sm:$0xff] %v807_v36  ;;  %v904_v48 = vmul.f32 %v2197_v57, %v807_v36 }
 0x280   :  { %v1567_v33 = vpop.eup %1566  ;;  %1331 = vst [vmem:[#allocation9 + $0x10] sm:$0xff] %v1263_v7   ;;  %v1268_v35 = vpack.c.bf16 %v903_v32, %v902_v29 }
 0x281   :  { %v1569_v50 = vpop.eup %1568  ;;  %v809_v4 = vmul.f32 %v1567_v33, %v2109_v12 }
 0x282   :  { %v808_v2 = vmul.f32 %v1569_v50, %v2129_v22  ;;  %1005 = vxpose.xlu0.b32.cont [14/16] %v2187_v63, 128  ;;  %1332 = vst [vmem:[#allocation9 + $0x18] sm:$0xff] %v1268_v35  }
 0x283   :  { %873 = vst [vmem:[#allocation6 + $0x50] sm:$0xff] %v809_v4  ;;  %v1571_v16 = vpop.eup %1570  ;;  %v906_v12 = vmul.f32 %v2197_v57, %v809_v4 }
 0x284   :  { %872 = vst [vmem:[#allocation6 + $0x48] sm:$0xff] %v808_v2  ;;  %v905_v37 = vmul.f32 %v2197_v57, %v808_v2  ;;  %v1573_v38 = vpop.eup %1572  ;;  %v810_v40 = vmul.f32 %v1571_v16, %v2123_v19 }
 0x285   :  { %v811_v6 = vmul.f32 %v1573_v38, %v2141_v28 }
 0x286   :  { %v1273_v41 = vpack.c.bf16 %v905_v37, %v904_v48  ;;  %874 = vst [vmem:[#allocation6 + $0x58] sm:$0xff] %v810_v40  ;;  %v907_v22 = vmul.f32 %v2197_v57, %v810_v40  ;;  %1006 = vxpose.xlu0.b32.cont [15/16] %v2179_v30, 128 }
 0x287   :  { %875 = vst [vmem:[#allocation6 + $0x60] sm:$0xff] %v811_v6 }
 0x288   :  { %v1575_v63 = vpop.eup %1574  ;;  %1333 = vst [vmem:[#allocation9 + $0x20] sm:$0xff] %v1273_v41   ;;  %v1278_v51 = vpack.c.bf16 %v907_v22, %v906_v12 }
 0x289   :  { %v1577_v11 = vpop.eup %1576  ;;  %v813_v43 = vmul.f32 %v1575_v63, %v2135_v25 }
 0x28a   :  { %v812_v19 = vmul.f32 %v1577_v11, %v2153_v34  ;;  %1334 = vst [vmem:[#allocation9 + $0x28] sm:$0xff] %v1278_v51   ;;  %1007 = vxpose.xlu0.b32.end [16/16] %v2192_v44, 128 }
 0x28b   :  { %877 = vst [vmem:[#allocation6 + $0x70] sm:$0xff] %v813_v43 }
 0x28c   :  { %1611 = shalt.err (!%p1608_p9)
}
 0x28d   :  { %1127 = dma.vmem_to_hbm [thread:$0]  %s1122_s1, 2048, %s2269_s10, [#allocation8], %s1689_s24, %s1689_s24, %s1690_s25   ;;  %v1579_v25 = vpop.eup %1578  ;;  %v908_v28 = vmul.f32 %v2197_v57, %v811_v6  ;;  %876 = vst [vmem:[#allocation6 + $0x68] sm:$0xff] %v812_v19  ;;  %v909_v34 = vmul.f32 %v2197_v57, %v812_v19  ;;  %v910_v53 = vmul.f32 %v2197_v57, %v813_v43 }
 0x28e   :  { %v814_v30 = vmul.f32 %v1579_v25, %v2147_v31  ;;  %s1693_s21 = smov [#allocation9]   ;;  %s1620_s23 = scalar_lea.vmem %s1110_s17, 2048 }
 0x28f   :  { %v1283_v44 = vpack.c.bf16 %v909_v34, %v908_v28  ;;  %s1133_s22 = sshll.u32 %s1693_s21, 4  ;;  %p1621_p10 = scmp.ne.s32.totalorder %s1110_s17, %s1620_s23  ;;  %s1134_s22 = int_to_ptr.vmem [resolvable:$true] %s1133_s22 }
 0x290   :  { %878 = vst [vmem:[#allocation6 + $0x78] sm:$0xff] %v814_v30  ;;  %v911_v56 = vmul.f32 %v2197_v57, %v814_v30  ;;  %p1625_p11 = scmp.lt.s32.totalorder %s1110_s17, %s1110_s17  ;;  %p1626_p12 = scmp.lt.s32.totalorder %s1620_s23, %s1620_s23 }
 0x291   :  { %1335 = vst [vmem:[#allocation9 + $0x30] sm:$0xff] %v1283_v44  }
 0x292   :  { %p1627_p13 = por %p1626_p12, %p1625_p11 }
 0x294   :  { %p1628_p0 = pnand %p1627_p13, %p1621_p10 }
 0x296   :  { %1631 = shalt.err (!%p1628_p0)
}
 0x297   :  { %1115 = dma.vmem_to_hbm [thread:$0]  %s1110_s17, 2048, %s2268_s9, [#allocation5], %s1689_s24, %s1689_s24, %s1690_s25   ;;  %v1288_v31 = vpack.c.bf16 %v911_v56, %v910_v53 }
 0x298   :  { %s1640_s27 = scalar_lea.vmem %s1134_s22, 1024  ;;  %p1645_p2 = scmp.lt.s32.totalorder %s1134_s22, %s1134_s22 }
 0x299   :  { %1336 = vst [vmem:[#allocation9 + $0x38] sm:$0xff] %v1288_v31   ;;  %p1641_p1 = scmp.ne.s32.totalorder %s1134_s22, %s1640_s27  ;;  %p1646_p3 = scmp.lt.s32.totalorder %s1640_s27, %s1640_s27 }
 0x29b   :  { %p1647_p4 = por %p1646_p3, %p1645_p2 }
 0x29d   :  { %p1648_p5 = pnand %p1647_p4, %p1641_p1 }
 0x29f   :  { %1651 = shalt.err (!%p1648_p5)
}
 0x2a0   :  { %s1694_s28 = smov 64   ;;  %s1695_s29 = smov 4  }
 0x2a1   :  { %1139 = dma.vmem_to_hbm [thread:$0]  %s1134_s22, 1024, %s2270_s11, [#allocation8], %s1694_s28, %s1694_s28, %s1695_s29  }
 0x2a2   :  { %s1696_s9 = smov [#allocation10]  }
 0x2a3   :  { %s1145_s11 = sshll.u32 %s1696_s9, 4  ;;  %s1146_s11 = int_to_ptr.vmem [resolvable:$true] %s1145_s11 }
 0x2a4   :  { %s1660_s24 = scalar_lea.vmem %s1146_s11, 1024  ;;  %p1665_p7 = scmp.lt.s32.totalorder %s1146_s11, %s1146_s11 }
 0x2a5   :  { %p1661_p6 = scmp.ne.s32.totalorder %s1146_s11, %s1660_s24  ;;  %p1666_p8 = scmp.lt.s32.totalorder %s1660_s24, %s1660_s24 }
 0x2a7   :  { %p1667_p9 = por %p1666_p8, %p1665_p7 }
 0x2a9   :  { %p1668_p10 = pnand %p1667_p9, %p1661_p6 }
 0x2ca   :  { %v1008_v57 = vpop.trf.xlu0 }
 0x2ce   :  { %v1009_v59 = vpop.trf.xlu0 }
 0x2cf   :  { %v1293_v9 = vpack.c.bf16 %v1009_v59, %v1008_v57 }
 0x2d1   :  { %1294 = vst [vmem:[#allocation10] sm:$0xff] %v1293_v9  }
 0x2d2   :  { %v1010_v62 = vpop.trf.xlu0 }
 0x2d6   :  { %v1011_v42 = vpop.trf.xlu0 }
 0x2d7   :  { %v1298_v46 = vpack.c.bf16 %v1011_v42, %v1010_v62 }
 0x2d9   :  { %1337 = vst [vmem:[#allocation10 + $0x8] sm:$0xff] %v1298_v46  }
 0x2da   :  { %v1012_v0 = vpop.trf.xlu0 }
 0x2de   :  { %v1013_v3 = vpop.trf.xlu0 }
 0x2df   :  { %v1303_v5 = vpack.c.bf16 %v1013_v3, %v1012_v0 }
 0x2e1   :  { %1338 = vst [vmem:[#allocation10 + $0x10] sm:$0xff] %v1303_v5  }
 0x2e2   :  { %v1014_v8 = vpop.trf.xlu0 }
 0x2e6   :  { %v1015_v39 = vpop.trf.xlu0 }
 0x2e7   :  { %v1308_v10 = vpack.c.bf16 %v1015_v39, %v1014_v8 }
 0x2e9   :  { %1339 = vst [vmem:[#allocation10 + $0x18] sm:$0xff] %v1308_v10  }
 0x2ea   :  { %v1016_v47 = vpop.trf.xlu0 }
 0x2ee   :  { %v1017_v54 = vpop.trf.xlu0 }
 0x2ef   :  { %v1313_v49 = vpack.c.bf16 %v1017_v54, %v1016_v47 }
 0x2f1   :  { %1340 = vst [vmem:[#allocation10 + $0x20] sm:$0xff] %v1313_v49  }
 0x2f2   :  { %v1018_v14 = vpop.trf.xlu0 }
 0x2f6   :  { %v1019_v15 = vpop.trf.xlu0 }
 0x2f7   :  { %v1318_v17 = vpack.c.bf16 %v1019_v15, %v1018_v14 }
 0x2f9   :  { %1341 = vst [vmem:[#allocation10 + $0x28] sm:$0xff] %v1318_v17  }
 0x2fa   :  { %v1020_v18 = vpop.trf.xlu0 }
 0x2fe   :  { %v1021_v20 = vpop.trf.xlu0 }
 0x2ff   :  { %v1323_v45 = vpack.c.bf16 %v1021_v20, %v1020_v18 }
 0x301   :  { %1342 = vst [vmem:[#allocation10 + $0x30] sm:$0xff] %v1323_v45  }
 0x302   :  { %v1022_v21 = vpop.trf.xlu0 }
 0x306   :  { %v1023_v52 = vpop.trf.xlu0 }
 0x307   :  { %v1328_v61 = vpack.c.bf16 %v1023_v52, %v1022_v21 }
 0x309   :  { %1343 = vst [vmem:[#allocation10 + $0x38] sm:$0xff] %v1328_v61  }
 0x30a   :  { %1671 = shalt.err (!%p1668_p10)
}
 0x30b   :  { %1151 = dma.vmem_to_hbm [thread:$0]  %s1146_s11, 1024, %s2271_s12, [#allocation11], %s1694_s28, %s1694_s28, %s1695_s29  }
 0x30c   :  { %1682 = dma.done.wait [#allocation5], 2048  }
 0x30d   :  { %1683 = vsyncadd [#allocation5], 4294965248 }
 0x30e   :  { %1684 = dma.done.wait [#allocation8], 3072  }
 0x30f   :  { %1685 = vsyncadd [#allocation8], 4294964224 }
 0x310   :  { %1686 = dma.done.wait [#allocation11], 1024  }
 0x311   :  { %1687 = vsyncadd [#allocation11], 4294966272 }
 0x312   :  { %1164 = vsyncpa [#allocation4], 1 }
 0x313   :  { %1165 = vsyncpa [#allocation5], 1 }
 0x314   :  { %1166 = vsyncpa [#allocation8], 1 }
 0x315   :  { %1167 = vsyncpa [#allocation11], 1 }

</bundles_post_ra>
